<compile_context>
chip_gen: v7x
topology: tpu7x:2x2x1
jax: 0.10.0
libtpu: 0.0.40
codegen_flags: <defaults>
</compile_context>

<pallas_src>
import functools

import jax
import jax.numpy as jnp
from jax import lax
from jax.experimental import pallas as pl
from jax.experimental.pallas import tpu as pltpu


_MAX_TILE_ROWS = 8192
_MiB = 1024 * 1024


def _vmem_capacity_bytes():
    """Per-TensorCore VMEM capacity; conservative 64 MiB fallback (v7x)."""
    try:
        info = pltpu.get_tpu_info()
        cap = getattr(info, "vmem_capacity_bytes", None)
        if cap:
            return int(cap)
    except Exception:  # not on TPU / API unavailable -> be conservative
        pass
    return 64 * _MiB


def _add_norm_kernel(x_ref, r_ref, gamma_ref, beta_ref, o_ref, *, eps):
    # x_ref / r_ref / o_ref: (tile_rows, d_model) in VMEM
    # gamma_ref / beta_ref : (1, d_model) in VMEM, resident across the grid
    y = x_ref[...].astype(jnp.float32) + r_ref[...].astype(jnp.float32)

    d = y.shape[-1]
    inv_d = jnp.float32(1.0 / d)

    # Two-pass statistics (torch.nn.LayerNorm-equivalent numerics): mean,
    # then variance of the centered values. Avoids catastrophic cancellation
    # of E[y^2] - mean^2 when |mean| >> std.
    mean = jnp.sum(y, axis=-1, keepdims=True) * inv_d
    centered = y - mean
    var = jnp.sum(centered * centered, axis=-1, keepdims=True) * inv_d
    inv = lax.rsqrt(var + jnp.float32(eps))  # EUP slot

    gamma32 = gamma_ref[...].astype(jnp.float32)
    beta32 = beta_ref[...].astype(jnp.float32)

    o_ref[...] = (centered * inv * gamma32 + beta32).astype(o_ref.dtype)


def _per_row_step_bytes(d_model, itemsize):
    # Per grid step, per row of the tile:
    #   * x, residual, out blocks: double-buffered by the pipeline
    #     -> 3 arrays * 2 buffers * d_model * itemsize
    #   * in-kernel fp32 intermediates (y, centered, fp32 out temp):
    #     single-buffered -> 3 * d_model * 4
    return 6 * d_model * itemsize + 3 * d_model * 4


def _pick_tile_rows(rows, d_model, itemsize, budget_bytes):
    # Sublane packing: 8 rows for 32-bit, 16 for bf16, 32 for int8/fp8.
    pack = 8 * max(1, 4 // itemsize)
    max_from_budget = budget_bytes // _per_row_step_bytes(d_model, itemsize)
    tile = min(_MAX_TILE_ROWS, max(pack, max_from_budget))
    tile = max(pack, (tile // pack) * pack)
    # Don't make the tile bigger than the (pack-rounded) row count.
    rows_rounded = ((rows + pack - 1) // pack) * pack
    tile = min(tile, rows_rounded)
    return tile


def add_norm(x, residual, gamma, beta, *, eps=1e-6):
    """LayerNorm(x + residual) along the last axis (d_model)."""
    assert x.shape == residual.shape
    orig_shape = x.shape
    d_model = orig_shape[-1]
    rows = 1
    for s in orig_shape[:-1]:
        rows *= s

    itemsize = jnp.dtype(x.dtype).itemsize

    capacity = _vmem_capacity_bytes()
    # Tile-picking budget: ~70% of per-TC VMEM, but never within 16 MiB of the
    # physical ceiling (Mosaic internal scratch + headroom).
    budget = min(capacity - 16 * _MiB, int(capacity * 0.70))
    budget = max(budget, 16 * _MiB)

    tile_rows = _pick_tile_rows(rows, d_model, itemsize, budget)

    x2 = x.reshape(rows, d_model)
    r2 = residual.reshape(rows, d_model)
    g2 = gamma.reshape(1, d_model)
    b2 = beta.reshape(1, d_model)

    # No padding: Pallas masks the partial last block (reads of the tail are
    # unspecified but processed row-wise and never written back).
    grid = (pl.cdiv(rows, tile_rows),)

    # Scoped VMEM sized to the actual working set (double-buffered blocks +
    # single-buffered fp32 intermediates + resident gamma/beta) plus slack,
    # clamped generation-aware below physical capacity.
    working_set = tile_rows * _per_row_step_bytes(d_model, itemsize)
    working_set += 4 * d_model * itemsize  # gamma/beta (double-buffered)
    vmem_limit = working_set + 4 * _MiB
    vmem_limit = max(vmem_limit, 32 * _MiB)
    vmem_limit = min(vmem_limit, capacity - 16 * _MiB)
    vmem_limit = max(vmem_limit, 16 * _MiB)

    kernel = functools.partial(_add_norm_kernel, eps=eps)

    out = pl.pallas_call(
        kernel,
        out_shape=jax.ShapeDtypeStruct((rows, d_model), x.dtype),
        grid=grid,
        in_specs=[
            pl.BlockSpec((tile_rows, d_model), lambda i: (i, 0)),
            pl.BlockSpec((tile_rows, d_model), lambda i: (i, 0)),
            pl.BlockSpec((1, d_model), lambda i: (0, 0)),
            pl.BlockSpec((1, d_model), lambda i: (0, 0)),
        ],
        out_specs=pl.BlockSpec((tile_rows, d_model), lambda i: (i, 0)),
        compiler_params=pltpu.CompilerParams(
            # "parallel" lets the runtime shard the row axis across
            # TensorCores on multi-TC chips (v7x); the op is HBM-bound so the
            # gain is step-overhead amortization, not 2x.
            dimension_semantics=("parallel",),
            vmem_limit_bytes=int(vmem_limit),
        ),
    )(x2, r2, g2, b2)

    return out.reshape(orig_shape)


if __name__ == "__main__":
    # Small demo shape; d_model chosen lane-dense (multiple of 128).
    batch, seq, d_model = 2, 8, 128
    eps = 1e-6  # matches the PyTorch module's default (eps=1e-06)

    key = jax.random.PRNGKey(0)
    kx, kr = jax.random.split(key)
    x = jax.random.normal(kx, (batch, seq, d_model), dtype=jnp.float32)
    residual = jax.random.normal(kr, (batch, seq, d_model), dtype=jnp.float32)

    # nn.LayerNorm init: weight = ones, bias = zeros (deterministic).
    gamma = jnp.ones((d_model,), dtype=jnp.float32)
    beta = jnp.zeros((d_model,), dtype=jnp.float32)

    out = add_norm(x, residual, gamma, beta, eps=eps)
    out = jax.block_until_ready(out)

    # Reference check (plain JAX, mirrors torch.nn.LayerNorm semantics).
    y = x + residual
    mean = jnp.mean(y, axis=-1, keepdims=True)
    var = jnp.mean((y - mean) ** 2, axis=-1, keepdims=True)
    ref = (y - mean) / jnp.sqrt(var + eps) * gamma + beta

    assert jnp.allclose(out, ref, atol=1e-5, rtol=1e-5), "mismatch vs reference"
    print("KERNEL_OK")
</pallas_src>

<mosaic_0001>
module attributes {stable_mosaic.version = 11 : i64} {
  func.func @_add_norm_kernel(%arg0: i32, %arg1: memref<16x128xf32, #tpu.memory_space<vmem>>, %arg2: memref<16x128xf32, #tpu.memory_space<vmem>>, %arg3: memref<1x128xf32, #tpu.memory_space<vmem>>, %arg4: memref<1x128xf32, #tpu.memory_space<vmem>>, %arg5: memref<16x128xf32, #tpu.memory_space<vmem>>) attributes {dimension_semantics = [#tpu.dimension_semantics<parallel>], iteration_bounds = array<i64: 1>, scalar_prefetch = 0 : i64, scratch_operands = 0 : i64, tpu.core_type = #tpu.core_type<tc>, window_params = [{transform_indices = @transform_0, window_bounds = array<i64: 16, 128>}, {transform_indices = @transform_1, window_bounds = array<i64: 16, 128>}, {pipeline_mode = #tpu.pipeline_mode<synchronous>, transform_indices = @transform_2, window_bounds = array<i64: 1, 128>}, {pipeline_mode = #tpu.pipeline_mode<synchronous>, transform_indices = @transform_3, window_bounds = array<i64: 1, 128>}, {transform_indices = @transform_4, window_bounds = array<i64: 16, 128>}]} {
    %c0 = arith.constant 0 : index
    %c0_0 = arith.constant 0 : index
    %0 = vector.load %arg1[%c0, %c0_0] : memref<16x128xf32, #tpu.memory_space<vmem>>, vector<16x128xf32>
    %c0_1 = arith.constant 0 : index
    %c0_2 = arith.constant 0 : index
    %1 = vector.load %arg2[%c0_1, %c0_2] : memref<16x128xf32, #tpu.memory_space<vmem>>, vector<16x128xf32>
    %2 = arith.addf %0, %1 : vector<16x128xf32>
    %cst = arith.constant dense<0.000000e+00> : vector<16xf32>
    %3 = vector.multi_reduction <add>, %2, %cst [1] : vector<16x128xf32> to vector<16xf32>
    %4 = vector.shape_cast %3 : vector<16xf32> to vector<16x1xf32>
    %cst_3 = arith.constant 7.812500e-03 : f32
    %5 = vector.broadcast %cst_3 : f32 to vector<16x1xf32>
    %6 = arith.mulf %4, %5 : vector<16x1xf32>
    %7 = vector.broadcast %6 : vector<16x1xf32> to vector<16x128xf32>
    %8 = arith.subf %2, %7 : vector<16x128xf32>
    %9 = arith.mulf %8, %8 : vector<16x128xf32>
    %cst_4 = arith.constant dense<0.000000e+00> : vector<16xf32>
    %10 = vector.multi_reduction <add>, %9, %cst_4 [1] : vector<16x128xf32> to vector<16xf32>
    %11 = vector.shape_cast %10 : vector<16xf32> to vector<16x1xf32>
    %cst_5 = arith.constant 7.812500e-03 : f32
    %12 = vector.broadcast %cst_5 : f32 to vector<16x1xf32>
    %13 = arith.mulf %11, %12 : vector<16x1xf32>
    %cst_6 = arith.constant 9.99999997E-7 : f32
    %14 = vector.broadcast %cst_6 : f32 to vector<16x1xf32>
    %15 = arith.addf %13, %14 : vector<16x1xf32>
    %16 = math.rsqrt %15 : vector<16x1xf32>
    %c0_7 = arith.constant 0 : index
    %c0_8 = arith.constant 0 : index
    %17 = vector.load %arg3[%c0_7, %c0_8] : memref<1x128xf32, #tpu.memory_space<vmem>>, vector<1x128xf32>
    %c0_9 = arith.constant 0 : index
    %c0_10 = arith.constant 0 : index
    %18 = vector.load %arg4[%c0_9, %c0_10] : memref<1x128xf32, #tpu.memory_space<vmem>>, vector<1x128xf32>
    %19 = vector.broadcast %16 : vector<16x1xf32> to vector<16x128xf32>
    %20 = arith.mulf %8, %19 : vector<16x128xf32>
    %21 = vector.broadcast %17 : vector<1x128xf32> to vector<16x128xf32>
    %22 = arith.mulf %20, %21 : vector<16x128xf32>
    %23 = vector.broadcast %18 : vector<1x128xf32> to vector<16x128xf32>
    %24 = arith.addf %22, %23 : vector<16x128xf32>
    %c0_11 = arith.constant 0 : index
    %c0_12 = arith.constant 0 : index
    %25 = vector.load %arg5[%c0_11, %c0_12] : memref<16x128xf32, #tpu.memory_space<vmem>>, vector<16x128xf32>
    tpu.vector_store %arg5[%c0_11, %c0_12], %24 {strides = array<i32>} : memref<16x128xf32, #tpu.memory_space<vmem>>, vector<16x128xf32>,
    return
  }
  func.func @transform_0(%arg0: i32) -> (i32, i32) {
    %c0_i32 = arith.constant 0 : i32
    %c0_i32_0 = arith.constant 0 : i32
    return %arg0, %c0_i32 : i32, i32
  }
  func.func @transform_1(%arg0: i32) -> (i32, i32) {
    %c0_i32 = arith.constant 0 : i32
    %c0_i32_0 = arith.constant 0 : i32
    return %arg0, %c0_i32 : i32, i32
  }
  func.func @transform_2(%arg0: i32) -> (i32, i32) {
    %c0_i32 = arith.constant 0 : i32
    %c0_i32_0 = arith.constant 0 : i32
    %c0_i32_1 = arith.constant 0 : i32
    return %c0_i32, %c0_i32_0 : i32, i32
  }
  func.func @transform_3(%arg0: i32) -> (i32, i32) {
    %c0_i32 = arith.constant 0 : i32
    %c0_i32_0 = arith.constant 0 : i32
    %c0_i32_1 = arith.constant 0 : i32
    return %c0_i32, %c0_i32_0 : i32, i32
  }
  func.func @transform_4(%arg0: i32) -> (i32, i32) {
    %c0_i32 = arith.constant 0 : i32
    %c0_i32_0 = arith.constant 0 : i32
    return %arg0, %c0_i32 : i32, i32
  }
}

</mosaic_0001>

<bundles_post_ra>
// kernel: tpu_custom_call.1
= control target key start
LH: loop header
LB: loop body
LE: loop exit
PB: predicated region body
PF: predicated region fallthrough
CT: control target
= control target key end

     0   :  { %9 = vsyncpa [#allocation3], 0  ;;  %s276_s0 = inlined_call_operand.hbm [shape: f32[16,128], index: 0, kind: input, shape index: {}]   ;;  %s277_s1 = inlined_call_operand.hbm [shape: f32[16,128], index: 1, kind: input, shape index: {}]   ;;  %s278_s2 = inlined_call_operand.vmem [shape: f32[1,128], index: 2, kind: input, shape index: {}]   ;;  %s279_s3 = inlined_call_operand.vmem [shape: f32[1,128], index: 3, kind: input, shape index: {}]   ;;  %s280_s4 = inlined_call_operand.hbm [shape: f32[16,128], index: 4, kind: output, shape index: {}]  }
   0x1   :  { %10 = vsyncpa [#allocation6], 0 }
   0x2   :  { %11 = vsyncpa [#allocation4], 0  ;;  %s195_s15 = smov [#allocation2]   ;;  %s123_s19 = scalar_lea.hbm %s276_s0, 256 }
   0x3   :  { %s17_s16 = sshll.u32 %s195_s15, 4  ;;  %p124_p0 = scmp.ne.s32.totalorder %s276_s0, %s123_s19  ;;  %s18_s16 = int_to_ptr.vmem [resolvable:$true] %s17_s16 }
   0x4   :  { %p127_p1 = scmp.lt.u32.totalorder %s123_s19, %s276_s0 }
   0x6   :  { %p129_p2 = pnand %p127_p1, %p124_p0 }
   0x8   :  { %132 = shalt.err (!%p129_p2)
}
   0x9   :  { %s133_s24 = scalar_lea.vmem %s18_s16, 256  ;;  %p138_p4 = scmp.lt.s32.totalorder %s18_s16, %s18_s16 }
   0xa   :  { %p134_p3 = scmp.ne.s32.totalorder %s18_s16, %s133_s24  ;;  %p139_p5 = scmp.lt.s32.totalorder %s133_s24, %s133_s24 }
   0xc   :  { %p140_p6 = por %p139_p5, %p138_p4 }
   0xe   :  { %p141_p7 = pnand %p140_p6, %p134_p3 }
  0x10   :  { %144 = shalt.err (!%p141_p7)
}
  0x11   :  { %s196_s25 = smov 128   ;;  %s197_s26 = smov 8  }
  0x12   :  { %23 = dma.hbm_to_vmem [thread:$0]  %s276_s0, 256, %s18_s16, [#allocation3], %s196_s25, %s196_s25, %s197_s26  }
  0x13   :  { %s198_s29 = smov [#allocation5]   ;;  %s145_s7 = scalar_lea.hbm %s277_s1, 256 }
  0x14   :  { %s29_s30 = sshll.u32 %s198_s29, 4  ;;  %p146_p8 = scmp.ne.s32.totalorder %s277_s1, %s145_s7  ;;  %s30_s30 = int_to_ptr.vmem [resolvable:$true] %s29_s30 }
  0x15   :  { %p149_p9 = scmp.lt.u32.totalorder %s145_s7, %s277_s1 }
  0x17   :  { %p151_p10 = pnand %p149_p9, %p146_p8 }
  0x19   :  { %154 = shalt.err (!%p151_p10)
}
  0x1a   :  { %s155_s12 = scalar_lea.vmem %s30_s30, 256  ;;  %p160_p12 = scmp.lt.s32.totalorder %s30_s30, %s30_s30 }
  0x1b   :  { %p156_p11 = scmp.ne.s32.totalorder %s30_s30, %s155_s12  ;;  %p161_p13 = scmp.lt.s32.totalorder %s155_s12, %s155_s12 }
  0x1d   :  { %p162_p0 = por %p161_p13, %p160_p12 }
  0x1f   :  { %p163_p1 = pnand %p162_p0, %p156_p11 }
  0x21   :  { %166 = shalt.err (!%p163_p1)
}
  0x22   :  { %35 = dma.hbm_to_vmem [thread:$0]  %s277_s1, 256, %s30_s30, [#allocation6], %s196_s25, %s196_s25, %s197_s26  }
  0x23   :  { %189 = dma.done.wait [#allocation3], 256  }
  0x24   :  { %190 = vsyncadd [#allocation3], 4294967040 }
  0x25   :  { %191 = dma.done.wait [#allocation6], 256  }
  0x26   :  { %192 = vsyncadd [#allocation6], 4294967040  ;;  %v46_v0 = vld [vmem:[#allocation2] sm:$0xff]  ;;  %v48_v1 = vld [vmem:[#allocation5] sm:$0xff]  ;;  %s199_s17 = smov [#allocation7]  }
  0x27   :  { %v47_v2 = vld [vmem:[#allocation2 + $0x8] sm:$0xff]  ;;  %v50_v3 = vadd.f32 %v48_v1, %v46_v0  ;;  %v49_v4 = vld [vmem:[#allocation5 + $0x8] sm:$0xff]  ;;  %v112_v21 = vld [vmem:[%s278_s2] ss:$0 sm:$0xff]  ;;  %s99_s18 = sshll.u32 %s199_s17, 4  ;;  %s100_s18 = int_to_ptr.vmem [resolvable:$true] %s99_s18 }
  0x28   :  { %v51_v5 = vadd.f32 %v49_v4, %v47_v2  ;;  %v113_v23 = vld [vmem:[%s279_s3] ss:$0 sm:$0xff]  ;;  %s167_s19 = scalar_lea.vmem %s100_s18, 256  ;;  %p172_p3 = scmp.lt.s32.totalorder %s100_s18, %s100_s18 }
  0x29   :  { %52 = vadd.xlane.f32.xlu0 %v50_v3  ;;  %p168_p2 = scmp.ne.s32.totalorder %s100_s18, %s167_s19  ;;  %p173_p4 = scmp.lt.s32.totalorder %s167_s19, %s167_s19 }
  0x2b   :  { %p174_p5 = por %p173_p4, %p172_p3 }
  0x2d   :  { %54 = vadd.xlane.f32.xlu0 %v51_v5  ;;  %p175_p6 = pnand %p174_p5, %p168_p2 }
  0xb6   :  { %v53_v6 = vpop.xlane.xlu0 %52 }
  0xb7   :  { %v56_v7 = vmul.f32 0.0078125, %v53_v6 }
  0xb9   :  { %v58_v8 = vsub.f32 %v50_v3, %v56_v7 }
  0xba   :  { %v55_v9 = vpop.xlane.xlu0 %54 }
  0xbb   :  { %v57_v10 = vmul.f32 0.0078125, %v55_v9  ;;  %v60_v11 = vmul.f32 %v58_v8, %v58_v8 }
  0xbd   :  { %v59_v12 = vsub.f32 %v51_v5, %v57_v10  ;;  %62 = vadd.xlane.f32.xlu1 %v60_v11 }
  0xbf   :  { %v61_v13 = vmul.f32 %v59_v12, %v59_v12 }
  0xc1   :  { %64 = vadd.xlane.f32.xlu1 %v61_v13 }
 0x14a   :  { %v63_v14 = vpop.xlane.xlu1 %62 }
 0x14b   :  { %v66_v15 = vmul.f32 0.0078125, %v63_v14 }
 0x14d   :  { %v68_v16 = vadd.f32 1e-06, %v66_v15 }
 0x14e   :  { %v65_v17 = vpop.xlane.xlu1 %64 }
 0x14f   :  { %119 = vrsqrt.f32 %v68_v16  ;;  %v67_v18 = vmul.f32 0.0078125, %v65_v17 }
 0x151   :  { %v69_v19 = vadd.f32 1e-06, %v67_v18 }
 0x153   :  { %121 = vrsqrt.f32 %v69_v19 }
 0x159   :  { %v120_v20 = vpop.eup %119 }
 0x15a   :  { %v74_v22 = vmul.f32 %v120_v20, %v58_v8 }
 0x15c   :  { %v82_v24 = vmul.f32 %v112_v21, %v74_v22 }
 0x15d   :  { %v122_v25 = vpop.eup %121 }
 0x15e   :  { %v75_v26 = vmul.f32 %v122_v25, %v59_v12  ;;  %v90_v27 = vadd.f32 %v113_v23, %v82_v24 }
 0x160   :  { %v83_v28 = vmul.f32 %v112_v21, %v75_v26  ;;  %92 = vst [vmem:[#allocation7] sm:$0xff] %v90_v27 }
 0x162   :  { %v91_v29 = vadd.f32 %v113_v23, %v83_v28 }
 0x164   :  { %93 = vst [vmem:[#allocation7 + $0x8] sm:$0xff] %v91_v29 }
 0x165   :  { %178 = shalt.err (!%p175_p6)
}
 0x166   :  { %s179_s20 = scalar_lea.hbm %s280_s4, 256 }
 0x167   :  { %p180_p7 = scmp.ne.s32.totalorder %s280_s4, %s179_s20  ;;  %p183_p8 = scmp.lt.u32.totalorder %s179_s20, %s280_s4 }
 0x169   :  { %p185_p9 = pnand %p183_p8, %p180_p7 }
 0x16b   :  { %188 = shalt.err (!%p185_p9)
}
 0x16c   :  { %105 = dma.vmem_to_hbm [thread:$0]  %s100_s18, 256, %s280_s4, [#allocation4], %s196_s25, %s196_s25, %s197_s26  }
 0x16d   :  { %193 = dma.done.wait [#allocation4], 256  }
 0x16e   :  { %194 = vsyncadd [#allocation4], 4294967040 }
 0x16f   :  { %109 = vsyncpa [#allocation3], 1 }
 0x170   :  { %110 = vsyncpa [#allocation6], 1 }
 0x171   :  { %111 = vsyncpa [#allocation4], 1 }

</bundles_post_ra>
